<compile_context>
chip_gen: v7x
topology: tpu7x:2x2x1
jax: 0.10.0
libtpu: 0.0.40
codegen_flags: <defaults>
</compile_context>

<pallas_src>
import functools

import jax
import jax.numpy as jnp
from jax.experimental import pallas as pl
from jax.experimental.pallas import tpu as pltpu


_MAX_BLOCK_BYTES = 8 * 1024 * 1024      # per-block budget (fits v7x 64 MiB VMEM w/ double buffering)
_VMEM_LIMIT_BYTES = 64 * 1024 * 1024    # raise scoped VMEM limit (<= physical on v5e/v6e/v7x)


# --------------------------------------------------------------------------
# Pass 1: per-channel statistics (mean + std), one-pass sum / sumsq
# --------------------------------------------------------------------------
def stats_kernel(x_ref, y_ref, sum_ref, sumsq_ref, *, inv_hw):
    t = pl.program_id(1)

    @pl.when(t == 0)
    def _init():
        sum_ref[...] = jnp.zeros_like(sum_ref)
        sumsq_ref[...] = jnp.zeros_like(sumsq_ref)

    x = x_ref[...].astype(jnp.float32)                       # (BB, C, LT)
    sum_ref[...] += jnp.sum(x, axis=-1, keepdims=True)       # (BB, C, 1)
    sumsq_ref[...] += jnp.sum(x * x, axis=-1, keepdims=True)  # (BB, C, 1)

    @pl.when(t == pl.num_programs(1) - 1)
    def _finalize():
        mean = sum_ref[...] * inv_hw
        # one-pass variance; clamp against catastrophic cancellation
        var = jnp.maximum(sumsq_ref[...] * inv_hw - mean * mean, 0.0)
        y_ref[...] = jnp.sqrt(var) + mean                     # std + mean


# --------------------------------------------------------------------------
# Pass 2: tiny squeeze-excite MLP over ALL batches at once, (C, B) RHS
# --------------------------------------------------------------------------
def excite_kernel(y_ref, w1_ref, b1_ref, w2_ref, b2_ref, s_ref):
    y = y_ref[...]                                                        # (C, B)
    z = jnp.dot(w1_ref[...], y, preferred_element_type=jnp.float32)       # (C_r, B)
    z = jnp.maximum(z + b1_ref[...], 0.0)                                 # ReLU
    s = jnp.dot(w2_ref[...], z, preferred_element_type=jnp.float32)       # (C, B)
    s_ref[...] = jax.nn.sigmoid(s + b2_ref[...])                          # Sigmoid


# --------------------------------------------------------------------------
# Pass 3: channel-wise rescale, tiled elementwise
# --------------------------------------------------------------------------
def scale_kernel(x_ref, s_ref, o_ref):
    o_ref[...] = (x_ref[...] * s_ref[...]).astype(o_ref.dtype)


def _choose_tiling(B, C, HW, dtype_bytes=4):
    """Pick (batch_block, lane_tile, padded_HW) under the per-block VMEM budget."""
    max_lanes = max(128, (_MAX_BLOCK_BYTES // (C * dtype_bytes)) // 128 * 128)
    hw_pad = -(-HW // 128) * 128
    if hw_pad <= max_lanes:
        lt = hw_pad                     # single lane tile covering (padded) HW
    else:
        lt = min(max_lanes, 4096)       # large lane tile, multiple of 128
        hw_pad = -(-HW // lt) * lt
    bb = B if B * C * lt * dtype_bytes <= _MAX_BLOCK_BYTES else 1
    return bb, lt, hw_pad


def cca_layer(x, w1, b1, w2, b2):
    """x: (B, C, H, W). w1: (C_r, C), b1: (C_r, 1), w2: (C, C_r), b2: (C, 1)."""
    B, C, H, W = x.shape
    HW = H * W
    C_r = w1.shape[0]

    bb, lt, hw_pad = _choose_tiling(B, C, HW, jnp.dtype(x.dtype).itemsize)
    n_t = hw_pad // lt

    x_flat = x.reshape(B, C, HW)
    if hw_pad != HW:
        # zero padding does not affect sum/sumsq; we divide by the true HW below
        x_flat = jnp.pad(x_flat, ((0, 0), (0, 0), (0, hw_pad - HW)))

    # ---- pass 1: per-channel std + mean -------------------------------------
    y_stats = pl.pallas_call(
        functools.partial(stats_kernel, inv_hw=1.0 / float(HW)),
        out_shape=jax.ShapeDtypeStruct((B, C, 1), jnp.float32),
        grid_spec=pltpu.PrefetchScalarGridSpec(
            num_scalar_prefetch=0,
            grid=(B // bb, n_t),
            in_specs=[pl.BlockSpec((bb, C, lt), lambda g, t: (g, 0, t))],
            out_specs=pl.BlockSpec((bb, C, 1), lambda g, t: (g, 0, 0)),
            scratch_shapes=[pltpu.VMEM((bb, C, 1), jnp.float32),
                            pltpu.VMEM((bb, C, 1), jnp.float32)],
        ),
        compiler_params=pltpu.CompilerParams(
            dimension_semantics=("parallel", "arbitrary"),
            vmem_limit_bytes=_VMEM_LIMIT_BYTES),
    )(x_flat)

    # ---- pass 2: tiny excite MLP (all batches as one (C, B) RHS) -------------
    y_t = y_stats[:, :, 0].T                                  # (C, B)
    s_t = pl.pallas_call(
        excite_kernel,
        out_shape=jax.ShapeDtypeStruct((C, B), jnp.float32),
    )(y_t, w1, b1, w2, b2)
    s = s_t.T.reshape(B, C, 1)                                # (B, C, 1)

    # ---- pass 3: broadcasted channel-wise rescale ----------------------------
    out = pl.pallas_call(
        scale_kernel,
        out_shape=jax.ShapeDtypeStruct((B, C, hw_pad), x.dtype),
        grid_spec=pltpu.PrefetchScalarGridSpec(
            num_scalar_prefetch=0,
            grid=(B // bb, n_t),
            in_specs=[pl.BlockSpec((bb, C, lt), lambda g, t: (g, 0, t)),
                      pl.BlockSpec((bb, C, 1), lambda g, t: (g, 0, 0))],
            out_specs=pl.BlockSpec((bb, C, lt), lambda g, t: (g, 0, t)),
        ),
        compiler_params=pltpu.CompilerParams(
            dimension_semantics=("parallel", "parallel"),
            vmem_limit_bytes=_VMEM_LIMIT_BYTES),
    )(x_flat, s)

    if hw_pad != HW:
        out = out[:, :, :HW]
    return out.reshape(B, C, H, W)


def reference(x, w1, b1, w2, b2):
    # pure-JAX reference matching the PyTorch forward (two-pass variance)
    mean = jnp.mean(x, axis=(2, 3), keepdims=True)
    var = jnp.mean((x - mean) ** 2, axis=(2, 3), keepdims=True)
    std = jnp.sqrt(var)
    y = std + mean                                   # (B, C, 1, 1)
    yv = y[:, :, 0, 0]                               # (B, C)
    z = jnp.maximum(yv @ w1.T + b1[:, 0], 0.0)       # (B, C_r)
    s = jax.nn.sigmoid(z @ w2.T + b2[:, 0])          # (B, C)
    return x * s[:, :, None, None]


if __name__ == "__main__":
    B, C, H, W = 2, 32, 16, 16
    reduction = 8
    C_r = C // reduction

    key = jax.random.PRNGKey(0)
    kx, k1, k2, k3, k4 = jax.random.split(key, 5)

    x = jax.random.normal(kx, (B, C, H, W), dtype=jnp.float32)
    # deterministic synthetic parameters (not a checkpoint load)
    w1 = jax.random.normal(k1, (C_r, C), dtype=jnp.float32) * 0.1
    b1 = jax.random.normal(k2, (C_r, 1), dtype=jnp.float32) * 0.1
    w2 = jax.random.normal(k3, (C, C_r), dtype=jnp.float32) * 0.1
    b2 = jax.random.normal(k4, (C, 1), dtype=jnp.float32) * 0.1

    out = cca_layer(x, w1, b1, w2, b2)
    jax.block_until_ready(out)

    ref = reference(x, w1, b1, w2, b2)
    assert jnp.allclose(out, ref, atol=3e-5, rtol=3e-5), "mismatch vs reference"

    print("KERNEL_OK")
</pallas_src>

<mosaic_0001>
module attributes {stable_mosaic.version = 11 : i64} {
  func.func @stats_kernel(%arg0: i32, %arg1: i32, %arg2: memref<2x32x256xf32, #tpu.memory_space<vmem>>, %arg3: memref<2x32x1xf32, #tpu.memory_space<vmem>>, %arg4: memref<2x32x1xf32, #tpu.memory_space<vmem>>, %arg5: memref<2x32x1xf32, #tpu.memory_space<vmem>>) attributes {dimension_semantics = [#tpu.dimension_semantics<parallel>, #tpu.dimension_semantics<arbitrary>], iteration_bounds = array<i64: 1, 1>, scalar_prefetch = 0 : i64, scratch_operands = 2 : i64, tpu.core_type = #tpu.core_type<tc>, window_params = [{transform_indices = @transform_0, window_bounds = array<i64: 2, 32, 256>}, {transform_indices = @transform_1, window_bounds = array<i64: 2, 32, 1>}]} {
    %c0_i32 = arith.constant 0 : i32
    %0 = arith.cmpi eq, %arg1, %c0_i32 : i32
    %1 = arith.extui %0 : i1 to i32
    %c0_i32_0 = arith.constant 0 : i32
    %2 = arith.cmpi ne, %1, %c0_i32_0 : i32
    scf.if %2 {
      %cst_18 = arith.constant 0.000000e+00 : f32
      %18 = vector.broadcast %cst_18 : f32 to vector<2x32x1xf32>
      %c0_19 = arith.constant 0 : index
      %c0_20 = arith.constant 0 : index
      %c0_21 = arith.constant 0 : index
      %19 = vector.load %arg4[%c0_19, %c0_20, %c0_21] : memref<2x32x1xf32, #tpu.memory_space<vmem>>, vector<2x32x1xf32>
      tpu.vector_store %arg4[%c0_19, %c0_20, %c0_21], %18 {strides = array<i32>} : memref<2x32x1xf32, #tpu.memory_space<vmem>>, vector<2x32x1xf32>,
      %cst_22 = arith.constant 0.000000e+00 : f32
      %20 = vector.broadcast %cst_22 : f32 to vector<2x32x1xf32>
      %c0_23 = arith.constant 0 : index
      %c0_24 = arith.constant 0 : index
      %c0_25 = arith.constant 0 : index
      %21 = vector.load %arg5[%c0_23, %c0_24, %c0_25] : memref<2x32x1xf32, #tpu.memory_space<vmem>>, vector<2x32x1xf32>
      tpu.vector_store %arg5[%c0_23, %c0_24, %c0_25], %20 {strides = array<i32>} : memref<2x32x1xf32, #tpu.memory_space<vmem>>, vector<2x32x1xf32>,
    } else {
    }
    %c0 = arith.constant 0 : index
    %c0_1 = arith.constant 0 : index
    %c0_2 = arith.constant 0 : index
    %3 = vector.load %arg2[%c0, %c0_1, %c0_2] : memref<2x32x256xf32, #tpu.memory_space<vmem>>, vector<2x32x256xf32>
    %c0_3 = arith.constant 0 : index
    %c0_4 = arith.constant 0 : index
    %c0_5 = arith.constant 0 : index
    %4 = vector.load %arg4[%c0_3, %c0_4, %c0_5] : memref<2x32x1xf32, #tpu.memory_space<vmem>>, vector<2x32x1xf32>
    %cst = arith.constant dense<0.000000e+00> : vector<2x32xf32>
    %5 = vector.multi_reduction <add>, %3, %cst [2] : vector<2x32x256xf32> to vector<2x32xf32>
    %6 = vector.shape_cast %5 : vector<2x32xf32> to vector<2x32x1xf32>
    %7 = arith.addf %4, %6 : vector<2x32x1xf32>
    %c0_6 = arith.constant 0 : index
    %c0_7 = arith.constant 0 : index
    %c0_8 = arith.constant 0 : index
    %8 = vector.load %arg4[%c0_6, %c0_7, %c0_8] : memref<2x32x1xf32, #tpu.memory_space<vmem>>, vector<2x32x1xf32>
    tpu.vector_store %arg4[%c0_6, %c0_7, %c0_8], %7 {strides = array<i32>} : memref<2x32x1xf32, #tpu.memory_space<vmem>>, vector<2x32x1xf32>,
    %c0_9 = arith.constant 0 : index
    %c0_10 = arith.constant 0 : index
    %c0_11 = arith.constant 0 : index
    %9 = vector.load %arg5[%c0_9, %c0_10, %c0_11] : memref<2x32x1xf32, #tpu.memory_space<vmem>>, vector<2x32x1xf32>
    %10 = arith.mulf %3, %3 : vector<2x32x256xf32>
    %cst_12 = arith.constant dense<0.000000e+00> : vector<2x32xf32>
    %11 = vector.multi_reduction <add>, %10, %cst_12 [2] : vector<2x32x256xf32> to vector<2x32xf32>
    %12 = vector.shape_cast %11 : vector<2x32xf32> to vector<2x32x1xf32>
    %13 = arith.addf %9, %12 : vector<2x32x1xf32>
    %c0_13 = arith.constant 0 : index
    %c0_14 = arith.constant 0 : index
    %c0_15 = arith.constant 0 : index
    %14 = vector.load %arg5[%c0_13, %c0_14, %c0_15] : memref<2x32x1xf32, #tpu.memory_space<vmem>>, vector<2x32x1xf32>
    tpu.vector_store %arg5[%c0_13, %c0_14, %c0_15], %13 {strides = array<i32>} : memref<2x32x1xf32, #tpu.memory_space<vmem>>, vector<2x32x1xf32>,
    %c0_i32_16 = arith.constant 0 : i32
    %15 = arith.cmpi eq, %arg1, %c0_i32_16 : i32
    %16 = arith.extui %15 : i1 to i32
    %c0_i32_17 = arith.constant 0 : i32
    %17 = arith.cmpi ne, %16, %c0_i32_17 : i32
    scf.if %17 {
      %c0_18 = arith.constant 0 : index
      %c0_19 = arith.constant 0 : index
      %c0_20 = arith.constant 0 : index
      %18 = vector.load %arg4[%c0_18, %c0_19, %c0_20] : memref<2x32x1xf32, #tpu.memory_space<vmem>>, vector<2x32x1xf32>
      %cst_21 = arith.constant 3.906250e-03 : f32
      %19 = vector.broadcast %cst_21 : f32 to vector<2x32x1xf32>
      %20 = arith.mulf %18, %19 : vector<2x32x1xf32>
      %c0_22 = arith.constant 0 : index
      %c0_23 = arith.constant 0 : index
      %c0_24 = arith.constant 0 : index
      %21 = vector.load %arg5[%c0_22, %c0_23, %c0_24] : memref<2x32x1xf32, #tpu.memory_space<vmem>>, vector<2x32x1xf32>
      %cst_25 = arith.constant 3.906250e-03 : f32
      %22 = vector.broadcast %cst_25 : f32 to vector<2x32x1xf32>
      %23 = arith.mulf %21, %22 : vector<2x32x1xf32>
      %24 = arith.mulf %20, %20 : vector<2x32x1xf32>
      %25 = arith.subf %23, %24 : vector<2x32x1xf32>
      %cst_26 = arith.constant 0.000000e+00 : f32
      %26 = vector.broadcast %cst_26 : f32 to vector<2x32x1xf32>
      %27 = arith.maximumf %25, %26 : vector<2x32x1xf32>
      %28 = math.sqrt %27 : vector<2x32x1xf32>
      %29 = arith.addf %28, %20 : vector<2x32x1xf32>
      %c0_27 = arith.constant 0 : index
      %c0_28 = arith.constant 0 : index
      %c0_29 = arith.constant 0 : index
      %30 = vector.load %arg3[%c0_27, %c0_28, %c0_29] : memref<2x32x1xf32, #tpu.memory_space<vmem>>, vector<2x32x1xf32>
      tpu.vector_store %arg3[%c0_27, %c0_28, %c0_29], %29 {strides = array<i32>} : memref<2x32x1xf32, #tpu.memory_space<vmem>>, vector<2x32x1xf32>,
    } else {
    }
    return
  }
  func.func @transform_0(%arg0: i32, %arg1: i32) -> (i32, i32, i32) {
    %c0_i32 = arith.constant 0 : i32
    %c0_i32_0 = arith.constant 0 : i32
    return %arg0, %c0_i32, %arg1 : i32, i32, i32
  }
  func.func @transform_1(%arg0: i32, %arg1: i32) -> (i32, i32, i32) {
    %c0_i32 = arith.constant 0 : i32
    %c0_i32_0 = arith.constant 0 : i32
    %c0_i32_1 = arith.constant 0 : i32
    return %arg0, %c0_i32, %c0_i32_0 : i32, i32, i32
  }
}

</mosaic_0001>

<bundles_post_ra>
// kernel: tpu_custom_call.1
= control target key start
LH: loop header
LB: loop body
LE: loop exit
PB: predicated region body
PF: predicated region fallthrough
CT: control target
= control target key end

     0   :  { %6 = vsyncpa [#allocation5], 0  ;;  %s545_s0 = inlined_call_operand.hbm [shape: f32[2,32,256], index: 0, kind: input, shape index: {}]   ;;  %s546_s1 = inlined_call_operand.hbm [shape: f32[2,32,1], index: 1, kind: output, shape index: {}]  }
   0x1   :  { %7 = vsyncpa [#allocation6], 0  ;;  %s392_s6 = smov [#allocation4]   ;;  %s344_s10 = scalar_lea.hbm %s545_s0, 2048 }
   0x2   :  { %s13_s7 = sshll.u32 %s392_s6, 4  ;;  %p345_p0 = scmp.ne.s32.totalorder %s545_s0, %s344_s10  ;;  %s14_s7 = int_to_ptr.vmem [resolvable:$true] %s13_s7 }
   0x3   :  { %p348_p1 = scmp.lt.u32.totalorder %s344_s10, %s545_s0 }
   0x5   :  { %p350_p2 = pnand %p348_p1, %p345_p0 }
   0x7   :  { %353 = shalt.err (!%p350_p2)
}
   0x8   :  { %s354_s15 = scalar_lea.vmem %s14_s7, 2048  ;;  %p359_p4 = scmp.lt.s32.totalorder %s14_s7, %s14_s7 }
   0x9   :  { %p355_p3 = scmp.ne.s32.totalorder %s14_s7, %s354_s15  ;;  %p360_p5 = scmp.lt.s32.totalorder %s354_s15, %s354_s15 }
   0xb   :  { %p361_p6 = por %p360_p5, %p359_p4 }
   0xd   :  { %p362_p7 = pnand %p361_p6, %p355_p3 }
   0xf   :  { %365 = shalt.err (!%p362_p7)
}
  0x10   :  { %s393_s16 = smov 256   ;;  %s394_s17 = smov 16  }
  0x11   :  { %19 = dma.hbm_to_vmem [thread:$0]  %s545_s0, 2048, %s14_s7, [#allocation5], %s393_s16, %s393_s16, %s394_s17  }
  0x12   :  { %388 = dma.done.wait [#allocation5], 2048  }
  0x13   :  { %389 = vsyncadd [#allocation5], 4294965248  ;;  %vm27_vm0 = vcmask 7168   ;;  %v395_v0 = vmov 0.0   ;;  %v48_v1 = vld [vmem:[#allocation4 + $0x20] sm:$0xff]  ;;  %v49_v2 = vld [vmem:[#allocation4 + $0x28] sm:$0xff] }
  0x14   :  { %30 = vst.msk [vmem:[#allocation2 + $0x10] sm:$0xff] %vm27_vm0, %v395_v0  ;;  %28 = vst.msk [vmem:[#allocation2] sm:$0xff] %vm27_vm0, %v395_v0  ;;  %v44_v3 = vld [vmem:[#allocation4] sm:$0xff]  ;;  %v74_v4 = vadd.f32 %v49_v2, %v48_v1  ;;  %v45_v5 = vld [vmem:[#allocation4 + $0x8] sm:$0xff]  ;;  %v121_v32 = vmul.f32 %v48_v1, %v48_v1  ;;  %v122_v33 = vmul.f32 %v49_v2, %v49_v2  ;;  %s396_s0 = smov [#allocation7]  }
  0x15   :  { %29 = vst.msk [vmem:[#allocation2 + $0x8] sm:$0xff] %vm27_vm0, %v395_v0  ;;  %31 = vst.msk [vmem:[#allocation2 + $0x18] sm:$0xff] %vm27_vm0, %v395_v0  ;;  %v50_v6 = vld [vmem:[#allocation4 + $0x30] sm:$0xff]  ;;  %v51_v7 = vld [vmem:[#allocation4 + $0x38] sm:$0xff]  ;;  %v68_v8 = vadd.f32 %v45_v5, %v44_v3  ;;  %v117_v26 = vmul.f32 %v44_v3, %v44_v3  ;;  %v118_v27 = vmul.f32 %v45_v5, %v45_v5  ;;  %s309_s20 = sshll.u32 %s396_s0, 4  ;;  %s310_s20 = int_to_ptr.vmem [resolvable:$true] %s309_s20 }
  0x16   :  { %32 = vst.msk [vmem:[#allocation2 + $0x20] sm:$0xff] %vm27_vm0, %v395_v0  ;;  %33 = vst.msk [vmem:[#allocation2 + $0x28] sm:$0xff] %vm27_vm0, %v395_v0  ;;  %v46_v9 = vld [vmem:[#allocation4 + $0x10] sm:$0xff]  ;;  %v47_v10 = vld [vmem:[#allocation4 + $0x18] sm:$0xff]  ;;  %75 = vadd.xlane.f32.xlu1 %v74_v4  ;;  %v77_v11 = vadd.f32 %v51_v7, %v50_v6  ;;  %v123_v30 = vmul.f32 %v50_v6, %v50_v6  ;;  %v124_v31 = vmul.f32 %v51_v7, %v51_v7  ;;  %s366_s21 = scalar_lea.vmem %s310_s20, 1024  ;;  %p371_p9 = scmp.lt.s32.totalorder %s310_s20, %s310_s20 }
  0x17   :  { %34 = vst.msk [vmem:[#allocation2 + $0x30] sm:$0xff] %vm27_vm0, %v395_v0  ;;  %35 = vst.msk [vmem:[#allocation2 + $0x38] sm:$0xff] %vm27_vm0, %v395_v0  ;;  %69 = vadd.xlane.f32.xlu0 %v68_v8  ;;  %v71_v12 = vadd.f32 %v47_v10, %v46_v9  ;;  %v54_v13 = vld [vmem:[#allocation4 + $0x50] sm:$0xff]  ;;  %v55_v14 = vld [vmem:[#allocation4 + $0x58] sm:$0xff]  ;;  %v119_v24 = vmul.f32 %v46_v9, %v46_v9  ;;  %v120_v25 = vmul.f32 %v47_v10, %v47_v10  ;;  %p367_p8 = scmp.ne.s32.totalorder %s310_s20, %s366_s21  ;;  %p372_p10 = scmp.lt.s32.totalorder %s366_s21, %s366_s21 }
  0x18   :  { %36 = vst.msk [vmem:[#allocation3] sm:$0xff] %vm27_vm0, %v395_v0  ;;  %37 = vst.msk [vmem:[#allocation3 + $0x8] sm:$0xff] %vm27_vm0, %v395_v0  ;;  %v52_v15 = vld [vmem:[#allocation4 + $0x40] sm:$0xff]  ;;  %v53_v16 = vld [vmem:[#allocation4 + $0x48] sm:$0xff]  ;;  %v83_v17 = vadd.f32 %v55_v14, %v54_v13  ;;  %v133_v34 = vadd.f32 %v118_v27, %v117_v26  ;;  %v142_v35 = vadd.f32 %v124_v31, %v123_v30 }
  0x19   :  { %38 = vst.msk [vmem:[#allocation3 + $0x10] sm:$0xff] %vm27_vm0, %v395_v0  ;;  %39 = vst.msk [vmem:[#allocation3 + $0x18] sm:$0xff] %vm27_vm0, %v395_v0  ;;  %v80_v18 = vadd.f32 %v53_v16, %v52_v15  ;;  %v58_v19 = vld [vmem:[#allocation4 + $0x70] sm:$0xff]  ;;  %v59_v20 = vld [vmem:[#allocation4 + $0x78] sm:$0xff]  ;;  %v136_v29 = vadd.f32 %v120_v25, %v119_v24  ;;  %v127_v36 = vmul.f32 %v54_v13, %v54_v13  ;;  %p373_p11 = por %p372_p10, %p371_p9 }
  0x1a   :  { %40 = vst.msk [vmem:[#allocation3 + $0x20] sm:$0xff] %vm27_vm0, %v395_v0  ;;  %41 = vst.msk [vmem:[#allocation3 + $0x28] sm:$0xff] %vm27_vm0, %v395_v0  ;;  %78 = vadd.xlane.f32.xlu1 %v77_v11  ;;  %v56_v21 = vld [vmem:[#allocation4 + $0x60] sm:$0xff]  ;;  %v57_v22 = vld [vmem:[#allocation4 + $0x68] sm:$0xff]  ;;  %v89_v23 = vadd.f32 %v59_v20, %v58_v19  ;;  %v128_v37 = vmul.f32 %v55_v14, %v55_v14  ;;  %v139_v38 = vadd.f32 %v122_v33, %v121_v32 }
  0x1b   :  { %42 = vst.msk [vmem:[#allocation3 + $0x30] sm:$0xff] %vm27_vm0, %v395_v0  ;;  %43 = vst.msk [vmem:[#allocation3 + $0x38] sm:$0xff] %vm27_vm0, %v395_v0  ;;  %72 = vadd.xlane.f32.xlu0 %v71_v12  ;;  %v86_v28 = vadd.f32 %v57_v22, %v56_v21  ;;  %v125_v39 = vmul.f32 %v52_v15, %v52_v15  ;;  %v126_v40 = vmul.f32 %v53_v16, %v53_v16  ;;  %v62_v49 = vld [vmem:[#allocation2 + $0x10] sm:$0xff]  ;;  %v60_v50 = vld [vmem:[#allocation2] sm:$0xff]  ;;  %p374_p12 = pnand %p373_p11, %p367_p8 }
  0x1c   :  { %v148_v41 = vadd.f32 %v128_v37, %v127_v36  ;;  %v131_v42 = vmul.f32 %v58_v19, %v58_v19  ;;  %v132_v43 = vmul.f32 %v59_v20, %v59_v20  ;;  %v129_v45 = vmul.f32 %v56_v21, %v56_v21  ;;  %v63_v55 = vld [vmem:[#allocation2 + $0x18] sm:$0xff]  ;;  %v61_v56 = vld [vmem:[#allocation2 + $0x8] sm:$0xff] }
  0x1d   :  { %v145_v44 = vadd.f32 %v126_v40, %v125_v39  ;;  %v130_v46 = vmul.f32 %v57_v22, %v57_v22  ;;  %v65_v61 = vld [vmem:[#allocation2 + $0x28] sm:$0xff]  ;;  %v64_v62 = vld [vmem:[#allocation2 + $0x20] sm:$0xff] }
  0x1e   :  { %84 = vadd.xlane.f32.xlu1 %v83_v17  ;;  %v154_v47 = vadd.f32 %v132_v43, %v131_v42  ;;  %v67_v3 = vld [vmem:[#allocation2 + $0x38] sm:$0xff]  ;;  %v66_v4 = vld [vmem:[#allocation2 + $0x30] sm:$0xff] }
  0x1f   :  { %81 = vadd.xlane.f32.xlu0 %v80_v18  ;;  %v151_v48 = vadd.f32 %v130_v46, %v129_v45  ;;  %v110_v9 = vld [vmem:[#allocation3 + $0x8] sm:$0xff]  ;;  %v109_v10 = vld [vmem:[#allocation3] sm:$0xff] }
  0x20   :  { %v112_v15 = vld [vmem:[#allocation3 + $0x18] sm:$0xff]  ;;  %v111_v16 = vld [vmem:[#allocation3 + $0x10] sm:$0xff] }
  0x21   :  { %v113_v25 = vld [vmem:[#allocation3 + $0x20] sm:$0xff] }
  0x22   :  { %90 = vadd.xlane.f32.xlu1 %v89_v23  ;;  %v114_v23 = vld [vmem:[#allocation3 + $0x28] sm:$0xff]  ;;  %v115_v39 = vld [vmem:[#allocation3 + $0x30] sm:$0xff] }
  0x23   :  { %87 = vadd.xlane.f32.xlu0 %v86_v28 }
  0x26   :  { %137 = vadd.xlane.f32.xlu1 %v136_v29 }
  0x27   :  { %134 = vadd.xlane.f32.xlu0 %v133_v34  ;;  %v116_v34 = vld [vmem:[#allocation3 + $0x38] sm:$0xff] }
  0x2a   :  { %143 = vadd.xlane.f32.xlu1 %v142_v35 }
  0x2b   :  { %140 = vadd.xlane.f32.xlu0 %v139_v38 }
  0x2e   :  { %149 = vadd.xlane.f32.xlu1 %v148_v41 }
  0x2f   :  { %146 = vadd.xlane.f32.xlu0 %v145_v44 }
  0x32   :  { %155 = vadd.xlane.f32.xlu1 %v154_v47 }
  0x33   :  { %152 = vadd.xlane.f32.xlu0 %v151_v48 }
  0xa3   :  { %v76_v51 = vpop.xlane.xlu1 %75 }
  0xa4   :  { %v94_v52 = vadd.f32 %v76_v51, %v62_v49  ;;  %v70_v53 = vpop.xlane.xlu0 %69 }
  0xa5   :  { %v92_v54 = vadd.f32 %v70_v53, %v60_v50 }
  0xa6   :  { %103 = vst.msk [vmem:[#allocation2 + $0x10] sm:$0xff] %vm27_vm0, %v94_v52 }
  0xa7   :  { %101 = vst.msk [vmem:[#allocation2] sm:$0xff] %vm27_vm0, %v92_v54  ;;  %v79_v57 = vpop.xlane.xlu1 %78 }
  0xa8   :  { %v95_v58 = vadd.f32 %v79_v57, %v63_v55  ;;  %v73_v59 = vpop.xlane.xlu0 %72 }
  0xa9   :  { %v93_v60 = vadd.f32 %v73_v59, %v61_v56 }
  0xaa   :  { %104 = vst.msk [vmem:[#allocation2 + $0x18] sm:$0xff] %vm27_vm0, %v95_v58 }
  0xab   :  { %102 = vst.msk [vmem:[#allocation2 + $0x8] sm:$0xff] %vm27_vm0, %v93_v60  ;;  %v85_v63 = vpop.xlane.xlu1 %84 }
  0xac   :  { %v97_v0 = vadd.f32 %v85_v63, %v65_v61  ;;  %v82_v1 = vpop.xlane.xlu0 %81 }
  0xad   :  { %v96_v2 = vadd.f32 %v82_v1, %v64_v62  ;;  %v178_v29 = vld [vmem:[#allocation2 + $0x10] sm:$0xff] }
  0xae   :  { %106 = vst.msk [vmem:[#allocation2 + $0x28] sm:$0xff] %vm27_vm0, %v97_v0  ;;  %v176_v19 = vld [vmem:[#allocation2] sm:$0xff]  ;;  %v458_v40 = vmul.f32 0.00390625, %v178_v29 }
  0xaf   :  { %105 = vst.msk [vmem:[#allocation2 + $0x20] sm:$0xff] %vm27_vm0, %v96_v2  ;;  %v91_v5 = vpop.xlane.xlu1 %90  ;;  %v450_v26 = vmul.f32 0.00390625, %v176_v19 }
  0xb0   :  { %v99_v6 = vadd.f32 %v91_v5, %v67_v3  ;;  %v88_v7 = vpop.xlane.xlu0 %87  ;;  %v210_v57 = vmul.f32 %v458_v40, %v458_v40 }
  0xb1   :  { %v98_v8 = vadd.f32 %v88_v7, %v66_v4  ;;  %v179_v27 = vld [vmem:[#allocation2 + $0x18] sm:$0xff]  ;;  %v208_v41 = vmul.f32 %v450_v26, %v450_v26 }
  0xb2   :  { %108 = vst.msk [vmem:[#allocation2 + $0x38] sm:$0xff] %vm27_vm0, %v99_v6  ;;  %v177_v17 = vld [vmem:[#allocation2 + $0x8] sm:$0xff]  ;;  %v453_v35 = vmul.f32 0.00390625, %v179_v27 }
  0xb3   :  { %107 = vst.msk [vmem:[#allocation2 + $0x30] sm:$0xff] %vm27_vm0, %v98_v8  ;;  %v138_v11 = vpop.xlane.xlu1 %137  ;;  %v447_v24 = vmul.f32 0.00390625, %v177_v17 }
  0xb4   :  { %v158_v12 = vadd.f32 %v138_v11, %v110_v9  ;;  %v135_v13 = vpop.xlane.xlu0 %134  ;;  %v211_v52 = vmul.f32 %v453_v35, %v453_v35 }
  0xb5   :  { %v157_v14 = vadd.f32 %v135_v13, %v109_v10  ;;  %v209_v36 = vmul.f32 %v447_v24, %v447_v24  ;;  %v181_v42 = vld [vmem:[#allocation2 + $0x28] sm:$0xff] }
  0xb6   :  { %166 = vst.msk [vmem:[#allocation3 + $0x8] sm:$0xff] %vm27_vm0, %v158_v12  ;;  %v180_v45 = vld [vmem:[#allocation2 + $0x20] sm:$0xff]  ;;  %v465_v53 = vmul.f32 0.00390625, %v181_v42 }
  0xb7   :  { %165 = vst.msk [vmem:[#allocation3] sm:$0xff] %vm27_vm0, %v157_v14  ;;  %v144_v18 = vpop.xlane.xlu1 %143  ;;  %v470_v58 = vmul.f32 0.00390625, %v180_v45 }
  0xb8   :  { %v160_v20 = vadd.f32 %v144_v18, %v112_v15  ;;  %v141_v21 = vpop.xlane.xlu0 %140  ;;  %v213_v2 = vmul.f32 %v465_v53, %v465_v53 }
  0xb9   :  { %v159_v22 = vadd.f32 %v141_v21, %v111_v16  ;;  %v183_v59 = vld [vmem:[#allocation2 + $0x38] sm:$0xff]  ;;  %v212_v7 = vmul.f32 %v470_v58, %v470_v58 }
  0xba   :  { %168 = vst.msk [vmem:[#allocation3 + $0x18] sm:$0xff] %vm27_vm0, %v160_v20  ;;  %v182_v62 = vld [vmem:[#allocation2 + $0x30] sm:$0xff]  ;;  %v475_v3 = vmul.f32 0.00390625, %v183_v59 }
  0xbb   :  { %167 = vst.msk [vmem:[#allocation3 + $0x10] sm:$0xff] %vm27_vm0, %v159_v22  ;;  %v150_v28 = vpop.xlane.xlu1 %149  ;;  %v479_v8 = vmul.f32 0.00390625, %v182_v62 }
  0xbc   :  { %v162_v30 = vadd.f32 %v150_v28, %v114_v23  ;;  %v147_v31 = vpop.xlane.xlu0 %146  ;;  %v215_v14 = vmul.f32 %v475_v3, %v475_v3 }
  0xbd   :  { %v193_v32 = vld [vmem:[#allocation3 + $0x8] sm:$0xff]  ;;  %v161_v33 = vadd.f32 %v147_v31, %v113_v25  ;;  %v214_v18 = vmul.f32 %v479_v8, %v479_v8 }
  0xbe   :  { %v201_v37 = vmul.f32 0.00390625, %v193_v32  ;;  %v192_v38 = vld [vmem:[#allocation3] sm:$0xff]  ;;  %170 = vst.msk [vmem:[#allocation3 + $0x28] sm:$0xff] %vm27_vm0, %v162_v30 }
  0xbf   :  { %v200_v43 = vmul.f32 0.00390625, %v192_v38  ;;  %169 = vst.msk [vmem:[#allocation3 + $0x20] sm:$0xff] %vm27_vm0, %v161_v33  ;;  %v156_v44 = vpop.xlane.xlu1 %155 }
  0xc0   :  { %v217_v46 = vsub.f32 %v201_v37, %v209_v36  ;;  %v164_v47 = vadd.f32 %v156_v44, %v116_v34  ;;  %v153_v48 = vpop.xlane.xlu0 %152 }
  0xc1   :  { %v216_v49 = vsub.f32 %v200_v43, %v208_v41  ;;  %v195_v50 = vld [vmem:[#allocation3 + $0x18] sm:$0xff]  ;;  %v163_v51 = vadd.f32 %v153_v48, %v115_v39 }
  0xc2   :  { %v225_v54 = vmax.f32 %v217_v46, 0.0  ;;  %v203_v55 = vmul.f32 0.00390625, %v195_v50  ;;  %v194_v56 = vld [vmem:[#allocation3 + $0x10] sm:$0xff]  ;;  %172 = vst.msk [vmem:[#allocation3 + $0x38] sm:$0xff] %vm27_vm0, %v164_v47 }
  0xc3   :  { %v224_v60 = vmax.f32 %v216_v49, 0.0  ;;  %v202_v61 = vmul.f32 0.00390625, %v194_v56  ;;  %171 = vst.msk [vmem:[#allocation3 + $0x30] sm:$0xff] %vm27_vm0, %v163_v51 }
  0xc4   :  { %v219_v63 = vsub.f32 %v203_v55, %v211_v52  ;;  %328 = vrsqrt.f32 %v225_v54  ;;  %vm241_vm1 = vcmp.eq.f32.partialorder %v225_v54, inf  ;;  %vm243_vm2 = vcmp.eq.f32.partialorder %v225_v54, 0.0 }
  0xc5   :  { %v218_v0 = vsub.f32 %v202_v61, %v210_v57  ;;  %v197_v1 = vld [vmem:[#allocation3 + $0x28] sm:$0xff]  ;;  %330 = vrsqrt.f32 %v224_v60  ;;  %v244_v31 = vand.u32 2147483648, %v225_v54  ;;  %vm234_vm3 = vcmp.eq.f32.partialorder %v224_v60, inf }
  0xc6   :  { %v227_v4 = vmax.f32 %v219_v63, 0.0  ;;  %v205_v5 = vmul.f32 0.00390625, %v197_v1  ;;  %v196_v6 = vld [vmem:[#allocation3 + $0x20] sm:$0xff]  ;;  %v237_v32 = vand.u32 2147483648, %v224_v60  ;;  %vm236_vm4 = vcmp.eq.f32.partialorder %v224_v60, 0.0 }
  0xc7   :  { %v226_v9 = vmax.f32 %v218_v0, 0.0  ;;  %v204_v10 = vmul.f32 0.00390625, %v196_v6 }
  0xc8   :  { %v221_v11 = vsub.f32 %v205_v5, %v213_v2  ;;  %332 = vrsqrt.f32 %v227_v4  ;;  %vm255_vm5 = vcmp.eq.f32.partialorder %v227_v4, inf  ;;  %v258_v44 = vand.u32 2147483648, %v227_v4 }
  0xc9   :  { %v220_v12 = vsub.f32 %v204_v10, %v212_v7  ;;  %v199_v13 = vld [vmem:[#allocation3 + $0x38] sm:$0xff]  ;;  %334 = vrsqrt.f32 %v226_v9  ;;  %vm248_vm6 = vcmp.eq.f32.partialorder %v226_v9, inf  ;;  %v251_v46 = vand.u32 2147483648, %v226_v9 }
  0xca   :  { %v483_v15 = vmax.f32 %v221_v11, 0.0  ;;  %v207_v16 = vmul.f32 0.00390625, %v199_v13  ;;  %v198_v17 = vld [vmem:[#allocation3 + $0x30] sm:$0xff]  ;;  %vm257_vm7 = vcmp.eq.f32.partialorder %v227_v4, 0.0  ;;  %vm250_vm8 = vcmp.eq.f32.partialorder %v226_v9, 0.0 }
  0xcb   :  { %v487_v19 = vmax.f32 %v220_v12, 0.0  ;;  %v206_v20 = vmul.f32 0.00390625, %v198_v17 }
  0xcc   :  { %v223_v21 = vsub.f32 %v207_v16, %v215_v14  ;;  %336 = vrsqrt.f32 %v483_v15  ;;  %vm269_vm9 = vcmp.eq.f32.partialorder %v483_v15, inf  ;;  %v272_v55 = vand.u32 2147483648, %v483_v15 }
  0xcd   :  { %v222_v22 = vsub.f32 %v206_v20, %v214_v18  ;;  %338 = vrsqrt.f32 %v487_v19  ;;  %vm262_vm10 = vcmp.eq.f32.partialorder %v487_v19, inf  ;;  %v265_v57 = vand.u32 2147483648, %v487_v19 }
  0xce   :  { %v329_v23 = vpop.eup %328  ;;  %v491_v25 = vmax.f32 %v223_v21, 0.0  ;;  %vm271_vm11 = vcmp.eq.f32.partialorder %v483_v15, 0.0  ;;  %vm264_vm12 = vcmp.eq.f32.partialorder %v487_v19, 0.0 }
  0xcf   :  { %v331_v27 = vpop.eup %330  ;;  %v493_v28 = vmax.f32 %v222_v22, 0.0  ;;  %v240_v29 = vmul.f32 %v329_v23, %v225_v54 }
  0xd0   :  { %v233_v30 = vmul.f32 %v331_v27, %v224_v60  ;;  %340 = vrsqrt.f32 %v491_v25  ;;  %vm283_vm13 = vcmp.eq.f32.partialorder %v491_v25, inf  ;;  %v286_v2 = vand.u32 2147483648, %v491_v25 }
  0xd1   :  { %v242_v33 = vsel %vm241_vm1, %v225_v54, %v240_v29  ;;  %342 = vrsqrt.f32 %v493_v28  ;;  %vm276_vm14 = vcmp.eq.f32.partialorder %v493_v28, inf  ;;  %v279_v5 = vand.u32 2147483648, %v493_v28 }
  0xd2   :  { %v333_v34 = vpop.eup %332  ;;  %v235_v36 = vsel %vm234_vm3, %v224_v60, %v233_v30  ;;  %v245_v37 = vsel %vm243_vm2, %v244_v31, %v242_v33  ;;  %vm285_vm15 = vcmp.eq.f32.partialorder %v491_v25, 0.0  ;;  %vm278_vm1 = vcmp.eq.f32.partialorder %v493_v28, 0.0 }
  0xd3   :  { %v335_v38 = vpop.eup %334  ;;  %v238_v39 = vsel %vm236_vm4, %v237_v32, %v235_v36  ;;  %v254_v41 = vmul.f32 %v333_v34, %v227_v4  ;;  %v289_v42 = vadd.f32 %v245_v37, %v447_v24 }
  0xd4   :  { %v247_v43 = vmul.f32 %v335_v38, %v226_v9  ;;  %v288_v45 = vadd.f32 %v238_v39, %v450_v26 }
  0xd5   :  { %v256_v47 = vsel %vm255_vm5, %v227_v4, %v254_v41  ;;  %297 = vst.msk [vmem:[#allocation7 + $0x8] sm:$0xff] %vm27_vm0, %v289_v42 }
  0xd6   :  { %v337_v48 = vpop.eup %336  ;;  %v249_v49 = vsel %vm248_vm6, %v226_v9, %v247_v43  ;;  %v259_v50 = vsel %vm257_vm7, %v258_v44, %v256_v47  ;;  %296 = vst.msk [vmem:[#allocation7] sm:$0xff] %vm27_vm0, %v288_v45 }
  0xd7   :  { %v339_v51 = vpop.eup %338  ;;  %v252_v52 = vsel %vm250_vm8, %v251_v46, %v249_v49  ;;  %v268_v24 = vmul.f32 %v337_v48, %v483_v15  ;;  %v291_v54 = vadd.f32 %v259_v50, %v453_v35 }
  0xd8   :  { %v261_v26 = vmul.f32 %v339_v51, %v487_v19  ;;  %v290_v56 = vadd.f32 %v252_v52, %v458_v40 }
  0xd9   :  { %v270_v59 = vsel %vm269_vm9, %v483_v15, %v268_v24  ;;  %299 = vst.msk [vmem:[#allocation7 + $0x18] sm:$0xff] %vm27_vm0, %v291_v54 }
  0xda   :  { %v341_v60 = vpop.eup %340  ;;  %v263_v35 = vsel %vm262_vm10, %v487_v19, %v261_v26  ;;  %v273_v61 = vsel %vm271_vm11, %v272_v55, %v270_v59  ;;  %298 = vst.msk [vmem:[#allocation7 + $0x10] sm:$0xff] %vm27_vm0, %v290_v56 }
  0xdb   :  { %v343_v62 = vpop.eup %342  ;;  %v266_v40 = vsel %vm264_vm12, %v265_v57, %v263_v35  ;;  %v282_v63 = vmul.f32 %v341_v60, %v491_v25  ;;  %v293_v0 = vadd.f32 %v273_v61, %v465_v53 }
  0xdc   :  { %v275_v1 = vmul.f32 %v343_v62, %v493_v28  ;;  %v292_v4 = vadd.f32 %v266_v40, %v470_v58 }
  0xdd   :  { %v284_v6 = vsel %vm283_vm13, %v491_v25, %v282_v63  ;;  %301 = vst.msk [vmem:[#allocation7 + $0x28] sm:$0xff] %vm27_vm0, %v293_v0 }
  0xde   :  { %v277_v53 = vsel %vm276_vm14, %v493_v28, %v275_v1  ;;  %v287_v7 = vsel %vm285_vm15, %v286_v2, %v284_v6  ;;  %300 = vst.msk [vmem:[#allocation7 + $0x20] sm:$0xff] %vm27_vm0, %v292_v4 }
  0xdf   :  { %v280_v58 = vsel %vm278_vm1, %v279_v5, %v277_v53  ;;  %v295_v9 = vadd.f32 %v287_v7, %v475_v3 }
  0xe0   :  { %v294_v10 = vadd.f32 %v280_v58, %v479_v8 }
  0xe1   :  { %303 = vst.msk [vmem:[#allocation7 + $0x38] sm:$0xff] %vm27_vm0, %v295_v9 }
  0xe2   :  { %302 = vst.msk [vmem:[#allocation7 + $0x30] sm:$0xff] %vm27_vm0, %v294_v10 }
  0xe3   :  { %377 = shalt.err (!%p374_p12)
}
  0xe4   :  { %s378_s24 = scalar_lea.hbm %s546_s1, 1024 }
  0xe5   :  { %p379_p13 = scmp.ne.s32.totalorder %s546_s1, %s378_s24  ;;  %p382_p0 = scmp.lt.u32.totalorder %s378_s24, %s546_s1 }
  0xe7   :  { %p384_p1 = pnand %p382_p0, %p379_p13 }
  0xe9   :  { %387 = shalt.err (!%p384_p1)
}
  0xea   :  { %s397_s29 = smov 128   ;;  %s398_s30 = smov 8  }
  0xeb   :  { %315 = dma.vmem_to_hbm [thread:$0]  %s310_s20, 1024, %s546_s1, [#allocation6], %s397_s29, %s397_s29, %s398_s30  }
  0xec   :  { %390 = dma.done.wait [#allocation6], 1024  }
  0xed   :  { %391 = vsyncadd [#allocation6], 4294966272 }
  0xee   :  { %319 = vsyncpa [#allocation5], 1 }
  0xef   :  { %320 = vsyncpa [#allocation6], 1 }

</bundles_post_ra>
